<compile_context>
chip_gen: v7x
topology: tpu7x:2x2x1
jax: 0.10.0
libtpu: 0.0.40
codegen_flags: <defaults>
</compile_context>

<pallas_src>
import math
from typing import NamedTuple

import jax
import jax.numpy as jnp
from jax.experimental import pallas as pl
from jax.experimental.pallas import tpu as pltpu

EPS = 1e-06
LOG_SIG_MAX = 2.0
LOG_SIG_MIN = -20.0

L1_DIM = 128
L2_DIM = 128


def _round_up(x, m):
    return ((x + m - 1) // m) * m


class GaussianPolicyParams(NamedTuple):
    """Kernel-ready parameters (heads fused + lane-padded once, off the hot path)."""
    w1: jax.Array       # (state_dim, L1_DIM)
    b1: jax.Array       # (1, L1_DIM)
    w2: jax.Array       # (L1_DIM, L2_DIM)
    b2: jax.Array       # (1, L2_DIM)
    w_heads: jax.Array  # (L2_DIM, head_pad)  cols: [mean | log_std | zero pad]
    b_heads: jax.Array  # (1, head_pad)
    action_dim: int     # static python int


def prepare_gaussian_policy_params(raw_params):
    """One-time prep: fuse mean/log_std heads and pad to a 128-lane slab."""
    (w1, b1, w2, b2, wm, bm, ws, bs) = raw_params
    action_dim = wm.shape[1]
    w_heads = jnp.concatenate([wm, ws], axis=1)  # (L2_DIM, 2*A)
    b_heads = jnp.concatenate([bm, bs], axis=1)  # (1, 2*A)
    head_pad = max(128, _round_up(2 * action_dim, 128))
    pad_cols = head_pad - 2 * action_dim
    if pad_cols:
        w_heads = jnp.pad(w_heads, ((0, 0), (0, pad_cols)))
        b_heads = jnp.pad(b_heads, ((0, 0), (0, pad_cols)))
    return GaussianPolicyParams(w1, b1, w2, b2, w_heads, b_heads, action_dim)


def _make_gaussian_policy_kernel(action_dim, a2_pad):
    def kernel(x_ref, w1_ref, b1_ref, w2_ref, b2_ref, wh_ref, bh_ref, out_ref):
        # l1 + relu
        h1 = jnp.dot(x_ref[...], w1_ref[...], preferred_element_type=jnp.float32)
        h1 = jnp.maximum(h1 + b1_ref[...], 0.0)
        # l2 + relu
        h2 = jnp.dot(h1, w2_ref[...], preferred_element_type=jnp.float32)
        h2 = jnp.maximum(h2 + b2_ref[...], 0.0)
        # fused heads: columns [0, A) = mean, [A, 2A) = log_std, rest = zero pad
        heads = jnp.dot(h2, wh_ref[...], preferred_element_type=jnp.float32)
        heads = heads + bh_ref[...]
        col = jax.lax.broadcasted_iota(jnp.int32, heads.shape, dimension=1)
        # Single-sided mask is safe: padding columns are exactly zero (weights
        # and biases are zero-padded) and clip(0, -20, 2) == 0.
        heads = jnp.where(
            col >= action_dim, jnp.clip(heads, LOG_SIG_MIN, LOG_SIG_MAX), heads
        )
        # Transpose the aligned (tb, head_pad) block (XLU) and store only the
        # meaningful 2*A (rounded to 8) rows -> lane-dense, 16x less writeback.
        heads_t = heads.T  # (head_pad, tb)
        out_ref[...] = heads_t[:a2_pad, :].astype(out_ref.dtype)

    return kernel


def gaussian_policy_forward(state, params: GaussianPolicyParams, *, block_rows=1024):
    """GaussianPolicy.forward. state: (B, state_dim) f32 -> (mean, log_std)."""
    B, state_dim = state.shape
    action_dim = params.action_dim
    a2_pad = _round_up(2 * action_dim, 8)  # sublane-padded output height

    # Row-tile the batch. For the transposed (lane-major-in-batch) output, the
    # tile must be a multiple of 128 lanes unless there is a single tile.
    b8 = _round_up(B, 8)
    if b8 <= 128:
        tb = b8  # tiny batch: one tile, full-extent lane dim
    else:
        # >= 2 tiles when possible so both v7x TensorCores get a share of the
        # "parallel" batch axis; cap at block_rows (rounded to 128 lanes).
        tb = max(
            128,
            min(_round_up(block_rows, 128), _round_up(pl.cdiv(B, 2), 128)),
        )
    b_pad = _round_up(B, tb)
    x = state if b_pad == B else jnp.pad(state, ((0, b_pad - B), (0, 0)))

    grid = (b_pad // tb,)
    resident = lambda arr: pl.BlockSpec(arr.shape, lambda i: (0, 0))
    in_specs = [
        pl.BlockSpec((tb, state_dim), lambda i: (i, 0)),  # activations: tiled rows
        resident(params.w1), resident(params.b1),         # weights: VMEM-resident
        resident(params.w2), resident(params.b2),
        resident(params.w_heads), resident(params.b_heads),
    ]
    out_specs = pl.BlockSpec((a2_pad, tb), lambda i: (0, i))
    out_shape = jax.ShapeDtypeStruct((a2_pad, b_pad), jnp.float32)

    fused_t = pl.pallas_call(
        _make_gaussian_policy_kernel(action_dim, a2_pad),
        grid=grid,
        in_specs=in_specs,
        out_specs=out_specs,
        out_shape=out_shape,
        compiler_params=pltpu.CompilerParams(
            dimension_semantics=("parallel",),
            vmem_limit_bytes=16 << 20,
        ),
    )(x, params.w1, params.b1, params.w2, params.b2,
      params.w_heads, params.b_heads)

    # Single narrow slice of the padded buffer, then split mean / log_std.
    packed = fused_t[: 2 * action_dim, :B]      # (2A, B)
    mean = packed[:action_dim, :].T             # (B, A)
    log_std = packed[action_dim:, :].T          # (B, A)
    return mean, log_std


def xavier_uniform(key, fan_in, fan_out, gain=1.0):
    # Matches torch.nn.init.xavier_uniform_ (gain=1); stored as (in, out).
    bound = gain * math.sqrt(6.0 / (fan_in + fan_out))
    return jax.random.uniform(key, (fan_in, fan_out), jnp.float32, -bound, bound)


def init_gaussian_policy_params(key, state_dim, action_dim):
    k1, k2, k3, k4 = jax.random.split(key, 4)
    w1 = xavier_uniform(k1, state_dim, L1_DIM)
    b1 = jnp.zeros((1, L1_DIM), jnp.float32)
    w2 = xavier_uniform(k2, L1_DIM, L2_DIM)
    b2 = jnp.zeros((1, L2_DIM), jnp.float32)
    wm = xavier_uniform(k3, L2_DIM, action_dim)
    bm = jnp.zeros((1, action_dim), jnp.float32)
    ws = xavier_uniform(k4, L2_DIM, action_dim)
    bs = jnp.zeros((1, action_dim), jnp.float32)
    return (w1, b1, w2, b2, wm, bm, ws, bs)


def reference_forward(state, raw_params):
    (w1, b1, w2, b2, wm, bm, ws, bs) = raw_params
    h1 = jnp.maximum(state @ w1 + b1, 0.0)
    h2 = jnp.maximum(h1 @ w2 + b2, 0.0)
    mean = h2 @ wm + bm
    log_std = jnp.clip(h2 @ ws + bs, LOG_SIG_MIN, LOG_SIG_MAX)
    return mean, log_std


if __name__ == "__main__":
    key = jax.random.PRNGKey(0)
    k_param, k_state, k_state2 = jax.random.split(key, 3)

    batch = 8
    state_dim = 16
    action_dim = 4

    raw_params = init_gaussian_policy_params(k_param, state_dim, action_dim)
    params = prepare_gaussian_policy_params(raw_params)  # one-time, off hot path
    state = jax.random.normal(k_state, (batch, state_dim), jnp.float32)

    mean, log_std = gaussian_policy_forward(state, params)
    jax.block_until_ready((mean, log_std))

    # correctness check against a pure-JAX reference (single-tile grid)
    mean_ref, log_std_ref = reference_forward(state, raw_params)
    assert mean.shape == (batch, action_dim)
    assert log_std.shape == (batch, action_dim)
    assert jnp.allclose(mean, mean_ref, atol=1e-5, rtol=1e-5)
    assert jnp.allclose(log_std, log_std_ref, atol=1e-5, rtol=1e-5)

    # second check: larger, non-multiple-of-tile batch with a multi-step grid
    batch2 = 300
    state2 = jax.random.normal(k_state2, (batch2, state_dim), jnp.float32)
    mean2, log_std2 = gaussian_policy_forward(state2, params, block_rows=128)
    jax.block_until_ready((mean2, log_std2))
    mean2_ref, log_std2_ref = reference_forward(state2, raw_params)
    assert mean2.shape == (batch2, action_dim)
    assert log_std2.shape == (batch2, action_dim)
    assert jnp.allclose(mean2, mean2_ref, atol=1e-5, rtol=1e-5)
    assert jnp.allclose(log_std2, log_std2_ref, atol=1e-5, rtol=1e-5)

    # TODO(synk): GaussianPolicy.sample() (rsample + tanh squash + log_prob) is
    # left to the host/JAX side; only forward() is implemented as a kernel here.
    print("KERNEL_OK")
</pallas_src>

<mosaic_0001>
module attributes {stable_mosaic.version = 11 : i64} {
  func.func @kernel(%arg0: i32, %arg1: memref<8x16xf32, #tpu.memory_space<vmem>>, %arg2: memref<16x128xf32, #tpu.memory_space<vmem>>, %arg3: memref<1x128xf32, #tpu.memory_space<vmem>>, %arg4: memref<128x128xf32, #tpu.memory_space<vmem>>, %arg5: memref<1x128xf32, #tpu.memory_space<vmem>>, %arg6: memref<128x128xf32, #tpu.memory_space<vmem>>, %arg7: memref<1x128xf32, #tpu.memory_space<vmem>>, %arg8: memref<8x8xf32, #tpu.memory_space<vmem>>) attributes {dimension_semantics = [#tpu.dimension_semantics<parallel>], iteration_bounds = array<i64: 1>, scalar_prefetch = 0 : i64, scratch_operands = 0 : i64, tpu.core_type = #tpu.core_type<tc>, window_params = [{transform_indices = @transform_0, window_bounds = array<i64: 8, 16>}, {pipeline_mode = #tpu.pipeline_mode<synchronous>, transform_indices = @transform_1, window_bounds = array<i64: 16, 128>}, {pipeline_mode = #tpu.pipeline_mode<synchronous>, transform_indices = @transform_2, window_bounds = array<i64: 1, 128>}, {pipeline_mode = #tpu.pipeline_mode<synchronous>, transform_indices = @transform_3, window_bounds = array<i64: 128, 128>}, {pipeline_mode = #tpu.pipeline_mode<synchronous>, transform_indices = @transform_4, window_bounds = array<i64: 1, 128>}, {pipeline_mode = #tpu.pipeline_mode<synchronous>, transform_indices = @transform_5, window_bounds = array<i64: 128, 128>}, {pipeline_mode = #tpu.pipeline_mode<synchronous>, transform_indices = @transform_6, window_bounds = array<i64: 1, 128>}, {transform_indices = @transform_7, window_bounds = array<i64: 8, 8>}]} {
    %c0 = arith.constant 0 : index
    %c0_0 = arith.constant 0 : index
    %0 = vector.load %arg1[%c0, %c0_0] : memref<8x16xf32, #tpu.memory_space<vmem>>, vector<8x16xf32>
    %c0_1 = arith.constant 0 : index
    %c0_2 = arith.constant 0 : index
    %1 = vector.load %arg2[%c0_1, %c0_2] : memref<16x128xf32, #tpu.memory_space<vmem>>, vector<16x128xf32>
    %cst = arith.constant dense<0.000000e+00> : vector<8x128xf32>
    %2 = tpu.matmul %0, %1, %cst {dimension_numbers = #tpu.dot_dimension_numbers<[1], [0], [0], [1], [0, 0, 1, 1], [], []>} : vector<8x16xf32>, vector<16x128xf32>, vector<8x128xf32> -> vector<8x128xf32>
    %c0_3 = arith.constant 0 : index
    %c0_4 = arith.constant 0 : index
    %3 = vector.load %arg3[%c0_3, %c0_4] : memref<1x128xf32, #tpu.memory_space<vmem>>, vector<1x128xf32>
    %4 = vector.broadcast %3 : vector<1x128xf32> to vector<8x128xf32>
    %5 = arith.addf %2, %4 : vector<8x128xf32>
    %cst_5 = arith.constant 0.000000e+00 : f32
    %6 = vector.broadcast %cst_5 : f32 to vector<8x128xf32>
    %7 = arith.maximumf %5, %6 : vector<8x128xf32>
    %c0_6 = arith.constant 0 : index
    %c0_7 = arith.constant 0 : index
    %8 = vector.load %arg4[%c0_6, %c0_7] : memref<128x128xf32, #tpu.memory_space<vmem>>, vector<128x128xf32>
    %cst_8 = arith.constant dense<0.000000e+00> : vector<8x128xf32>
    %9 = tpu.matmul %7, %8, %cst_8 {dimension_numbers = #tpu.dot_dimension_numbers<[1], [0], [0], [1], [0, 0, 1, 1], [], []>} : vector<8x128xf32>, vector<128x128xf32>, vector<8x128xf32> -> vector<8x128xf32>
    %c0_9 = arith.constant 0 : index
    %c0_10 = arith.constant 0 : index
    %10 = vector.load %arg5[%c0_9, %c0_10] : memref<1x128xf32, #tpu.memory_space<vmem>>, vector<1x128xf32>
    %11 = vector.broadcast %10 : vector<1x128xf32> to vector<8x128xf32>
    %12 = arith.addf %9, %11 : vector<8x128xf32>
    %cst_11 = arith.constant 0.000000e+00 : f32
    %13 = vector.broadcast %cst_11 : f32 to vector<8x128xf32>
    %14 = arith.maximumf %12, %13 : vector<8x128xf32>
    %c0_12 = arith.constant 0 : index
    %c0_13 = arith.constant 0 : index
    %15 = vector.load %arg6[%c0_12, %c0_13] : memref<128x128xf32, #tpu.memory_space<vmem>>, vector<128x128xf32>
    %cst_14 = arith.constant dense<0.000000e+00> : vector<8x128xf32>
    %16 = tpu.matmul %14, %15, %cst_14 {dimension_numbers = #tpu.dot_dimension_numbers<[1], [0], [0], [1], [0, 0, 1, 1], [], []>} : vector<8x128xf32>, vector<128x128xf32>, vector<8x128xf32> -> vector<8x128xf32>
    %c0_15 = arith.constant 0 : index
    %c0_16 = arith.constant 0 : index
    %17 = vector.load %arg7[%c0_15, %c0_16] : memref<1x128xf32, #tpu.memory_space<vmem>>, vector<1x128xf32>
    %18 = vector.broadcast %17 : vector<1x128xf32> to vector<8x128xf32>
    %19 = arith.addf %16, %18 : vector<8x128xf32>
    %20 = tpu.iota {dimensions = array<i32: 1>} : vector<8x128xi32>
    %c4_i32 = arith.constant 4 : i32
    %21 = vector.broadcast %c4_i32 : i32 to vector<8x128xi32>
    %22 = arith.cmpi sge, %20, %21 : vector<8x128xi32>
    %cst_17 = arith.constant -2.000000e+01 : f32
    %cst_18 = arith.constant 2.000000e+00 : f32
    %23 = vector.broadcast %cst_17 : f32 to vector<8x128xf32>
    %24 = arith.maximumf %23, %19 : vector<8x128xf32>
    %25 = vector.broadcast %cst_18 : f32 to vector<8x128xf32>
    %26 = arith.minimumf %25, %24 : vector<8x128xf32>
    %27 = arith.select %22, %26, %19 : vector<8x128xi1>, vector<8x128xf32>
    %28 = tpu.transpose %27, [1, 0] : vector<8x128xf32> -> vector<128x8xf32>
    %29 = vector.extract_strided_slice %28 {offsets = [0, 0], sizes = [8, 8], strides = [1, 1]} : vector<128x8xf32> to vector<8x8xf32>
    %c0_19 = arith.constant 0 : index
    %c0_20 = arith.constant 0 : index
    %30 = vector.load %arg8[%c0_19, %c0_20] : memref<8x8xf32, #tpu.memory_space<vmem>>, vector<8x8xf32>
    tpu.vector_store %arg8[%c0_19, %c0_20], %29 {strides = array<i32>} : memref<8x8xf32, #tpu.memory_space<vmem>>, vector<8x8xf32>,
    return
  }
  func.func @transform_0(%arg0: i32) -> (i32, i32) {
    %c0_i32 = arith.constant 0 : i32
    %c0_i32_0 = arith.constant 0 : i32
    return %arg0, %c0_i32 : i32, i32
  }
  func.func @transform_1(%arg0: i32) -> (i32, i32) {
    %c0_i32 = arith.constant 0 : i32
    %c0_i32_0 = arith.constant 0 : i32
    %c0_i32_1 = arith.constant 0 : i32
    return %c0_i32, %c0_i32_0 : i32, i32
  }
  func.func @transform_2(%arg0: i32) -> (i32, i32) {
    %c0_i32 = arith.constant 0 : i32
    %c0_i32_0 = arith.constant 0 : i32
    %c0_i32_1 = arith.constant 0 : i32
    return %c0_i32, %c0_i32_0 : i32, i32
  }
  func.func @transform_3(%arg0: i32) -> (i32, i32) {
    %c0_i32 = arith.constant 0 : i32
    %c0_i32_0 = arith.constant 0 : i32
    %c0_i32_1 = arith.constant 0 : i32
    return %c0_i32, %c0_i32_0 : i32, i32
  }
  func.func @transform_4(%arg0: i32) -> (i32, i32) {
    %c0_i32 = arith.constant 0 : i32
    %c0_i32_0 = arith.constant 0 : i32
    %c0_i32_1 = arith.constant 0 : i32
    return %c0_i32, %c0_i32_0 : i32, i32
  }
  func.func @transform_5(%arg0: i32) -> (i32, i32) {
    %c0_i32 = arith.constant 0 : i32
    %c0_i32_0 = arith.constant 0 : i32
    %c0_i32_1 = arith.constant 0 : i32
    return %c0_i32, %c0_i32_0 : i32, i32
  }
  func.func @transform_6(%arg0: i32) -> (i32, i32) {
    %c0_i32 = arith.constant 0 : i32
    %c0_i32_0 = arith.constant 0 : i32
    %c0_i32_1 = arith.constant 0 : i32
    return %c0_i32, %c0_i32_0 : i32, i32
  }
  func.func @transform_7(%arg0: i32) -> (i32, i32) {
    %c0_i32 = arith.constant 0 : i32
    %c0_i32_0 = arith.constant 0 : i32
    return %c0_i32, %arg0 : i32, i32
  }
}

</mosaic_0001>

<bundles_post_ra>
// kernel: tpu_custom_call.1
= control target key start
LH: loop header
LB: loop body
LE: loop exit
PB: predicated region body
PF: predicated region fallthrough
CT: control target
= control target key end

     0   :  { %12 = vsyncpa [#allocation3], 0  ;;  %s854_s0 = inlined_call_operand.hbm [shape: f32[8,16], index: 0, kind: input, shape index: {}]   ;;  %s855_s1 = inlined_call_operand.hbm [shape: f32[16,128], index: 1, kind: input, shape index: {}]   ;;  %s856_s2 = inlined_call_operand.vmem [shape: f32[1,128], index: 2, kind: input, shape index: {}]   ;;  %s857_s3 = inlined_call_operand.hbm [shape: f32[128,128], index: 3, kind: input, shape index: {}]   ;;  %s858_s4 = inlined_call_operand.vmem [shape: f32[1,128], index: 4, kind: input, shape index: {}]   ;;  %s859_s5 = inlined_call_operand.hbm [shape: f32[128,128], index: 5, kind: input, shape index: {}]   ;;  %s860_s6 = inlined_call_operand.vmem [shape: f32[1,128], index: 6, kind: input, shape index: {}]   ;;  %s861_s7 = inlined_call_operand.hbm [shape: f32[8,8], index: 7, kind: output, shape index: {}]  }
   0x1   :  { %13 = vsyncpa [#allocation6], 0 }
   0x2   :  { %14 = vsyncpa [#allocation9], 0 }
   0x3   :  { %15 = vsyncpa [#allocation4], 0  ;;  %s706_s24 = smov [#allocation5]   ;;  %s588_s28 = scalar_lea.hbm %s855_s1, 256 }
   0x4   :  { %s31_s25 = sshll.u32 %s706_s24, 4  ;;  %p589_p0 = scmp.ne.s32.totalorder %s855_s1, %s588_s28  ;;  %s32_s25 = int_to_ptr.vmem [resolvable:$true] %s31_s25 }
   0x5   :  { %p592_p1 = scmp.lt.u32.totalorder %s588_s28, %s855_s1 }
   0x7   :  { %p594_p2 = pnand %p592_p1, %p589_p0 }
   0x9   :  { %597 = shalt.err (!%p594_p2)
}
   0xa   :  { %s598_s10 = scalar_lea.vmem %s32_s25, 256  ;;  %p603_p4 = scmp.lt.s32.totalorder %s32_s25, %s32_s25 }
   0xb   :  { %p599_p3 = scmp.ne.s32.totalorder %s32_s25, %s598_s10  ;;  %p604_p5 = scmp.lt.s32.totalorder %s598_s10, %s598_s10 }
   0xd   :  { %p605_p6 = por %p604_p5, %p603_p4 }
   0xf   :  { %p606_p7 = pnand %p605_p6, %p599_p3 }
  0x11   :  { %609 = shalt.err (!%p606_p7)
}
  0x12   :  { %s707_s11 = smov 128   ;;  %s708_s12 = smov 8  }
  0x13   :  { %37 = dma.hbm_to_vmem [thread:$0]  %s855_s1, 256, %s32_s25, [#allocation6], %s707_s11, %s707_s11, %s708_s12  }
  0x14   :  { %s709_s15 = smov [#allocation2]   ;;  %s710_s17 = smov [#allocation7]  }
  0x15   :  { %s22_s16 = sshll.u32 %s709_s15, 4  ;;  %s45_s18 = sshll.u32 %s710_s17, 4  ;;  %s23_s16 = int_to_ptr.vmem [resolvable:$true] %s22_s16  ;;  %s46_s18 = int_to_ptr.vmem [resolvable:$true] %s45_s18 }
  0x16   :  { %s610_s21 = scalar_lea.hbm %s854_s0, 128 }
  0x17   :  { %p611_p8 = scmp.ne.s32.totalorder %s854_s0, %s610_s21  ;;  %p614_p9 = scmp.lt.u32.totalorder %s610_s21, %s854_s0 }
  0x19   :  { %p616_p10 = pnand %p614_p9, %p611_p8 }
  0x1b   :  { %619 = shalt.err (!%p616_p10)
}
  0x1c   :  { %s620_s1 = scalar_lea.vmem %s23_s16, 128  ;;  %p625_p12 = scmp.lt.s32.totalorder %s23_s16, %s23_s16 }
  0x1d   :  { %p621_p11 = scmp.ne.s32.totalorder %s23_s16, %s620_s1  ;;  %p626_p13 = scmp.lt.s32.totalorder %s620_s1, %s620_s1 }
  0x1f   :  { %p627_p0 = por %p626_p13, %p625_p12 }
  0x21   :  { %p628_p1 = pnand %p627_p0, %p621_p11 }
  0x23   :  { %631 = shalt.err (!%p628_p1)
}
  0x24   :  { %25 = dma.hbm_to_vmem [thread:$0]  %s854_s0, 128, %s23_s16, [#allocation3]  }
  0x25   :  { %s632_s30 = scalar_lea.hbm %s857_s3, 2048 }
  0x26   :  { %p633_p2 = scmp.ne.s32.totalorder %s857_s3, %s632_s30  ;;  %p636_p3 = scmp.lt.u32.totalorder %s632_s30, %s857_s3 }
  0x28   :  { %p638_p4 = pnand %p636_p3, %p633_p2 }
  0x2a   :  { %641 = shalt.err (!%p638_p4)
}
  0x2b   :  { %s642_s14 = scalar_lea.vmem %s46_s18, 2048  ;;  %p647_p6 = scmp.lt.s32.totalorder %s46_s18, %s46_s18 }
  0x2c   :  { %p643_p5 = scmp.ne.s32.totalorder %s46_s18, %s642_s14  ;;  %p648_p7 = scmp.lt.s32.totalorder %s642_s14, %s642_s14 }
  0x2e   :  { %p649_p8 = por %p648_p7, %p647_p6 }
  0x30   :  { %p650_p9 = pnand %p649_p8, %p643_p5 }
  0x32   :  { %653 = shalt.err (!%p650_p9)
}
  0x33   :  { %51 = dma.hbm_to_vmem [thread:$0]  %s857_s3, 2048, %s46_s18, [#allocation6], %s707_s11, %s707_s11, %s708_s12  }
  0x34   :  { %s711_s16 = smov [#allocation8]   ;;  %s654_s21 = scalar_lea.hbm %s859_s5, 2048 }
  0x35   :  { %s59_s17 = sshll.u32 %s711_s16, 4  ;;  %p655_p10 = scmp.ne.s32.totalorder %s859_s5, %s654_s21  ;;  %s60_s17 = int_to_ptr.vmem [resolvable:$true] %s59_s17 }
  0x36   :  { %p658_p11 = scmp.lt.u32.totalorder %s654_s21, %s859_s5 }
  0x38   :  { %p660_p12 = pnand %p658_p11, %p655_p10 }
  0x3a   :  { %663 = shalt.err (!%p660_p12)
}
  0x3b   :  { %s664_s1 = scalar_lea.vmem %s60_s17, 2048  ;;  %p669_p0 = scmp.lt.s32.totalorder %s60_s17, %s60_s17 }
  0x3c   :  { %p665_p13 = scmp.ne.s32.totalorder %s60_s17, %s664_s1  ;;  %p670_p1 = scmp.lt.s32.totalorder %s664_s1, %s664_s1 }
  0x3e   :  { %p671_p2 = por %p670_p1, %p669_p0 }
  0x40   :  { %p672_p3 = pnand %p671_p2, %p665_p13 }
  0x42   :  { %675 = shalt.err (!%p672_p3)
}
  0x43   :  { %65 = dma.hbm_to_vmem [thread:$0]  %s859_s5, 2048, %s60_s17, [#allocation9], %s707_s11, %s707_s11, %s708_s12  }
  0x44   :  { %698 = dma.done.wait [#allocation3], 128  }
  0x45   :  { %699 = vsyncadd [#allocation3], 4294967168 }
  0x46   :  { %700 = dma.done.wait [#allocation6], 2304  }
  0x47   :  { %701 = vsyncadd [#allocation6], 4294964992 }
  0x48   :  { %702 = dma.done.wait [#allocation9], 2048  }
  0x49   :  { %703 = vsyncadd [#allocation9], 4294965248  ;;  %v712_v0 = vmov 0.0|0.0   ;;  %vm713_vm0 = vmmov 0   ;;  %v714_v1 = vmov 0.0   ;;  %v81_v2 = vld [vmem:[#allocation5] sm:$0xff] }
  0x4a   :  { %527 = vmatprep.subr.bf16.mxu0 %v712_v0  ;;  %454 = vmatprep.mubr.msk.f32.mxu0 %vm713_vm0, %v714_v1  ;;  %v82_v3 = vld [vmem:[#allocation5 + $0x8] sm:$0xff]  ;;  %v165_v5 = vld [vmem:[#allocation7] sm:$0xff]  ;;  %v166_v6 = vld [vmem:[#allocation7 + $0x8] sm:$0xff]  ;;  %vm90_vm1 = vcmask 130048   ;;  %vm390_vm3 = vcmask 64512  }
  0x4b   :  { %530 = vmatprep.subr.bf16.mxu1 %v712_v0  ;;  %489 = vmatprep.mubr.msk.f32.mxu1 %vm713_vm0, %v714_v1  ;;  %v528_v4 = vpack.c.bf16 %v82_v3, %v81_v2  ;;  %v167_v7 = vld [vmem:[#allocation7 + $0x10] sm:$0xff]  ;;  %v531_v8 = vpack.c.bf16 %v166_v6, %v165_v5  ;;  %v168_v9 = vld [vmem:[#allocation7 + $0x18] sm:$0xff]  ;;  %v80_v10 = vld [vmem:[#allocation2] sm:$0xff] }
  0x4c   :  { %v534_v11 = vpack.c.bf16 %v168_v9, %v167_v7  ;;  %v169_v12 = vld [vmem:[#allocation7 + $0x20] sm:$0xff]  ;;  %v170_v13 = vld [vmem:[#allocation7 + $0x28] sm:$0xff]  ;;  %v171_v15 = vld [vmem:[#allocation7 + $0x30] sm:$0xff] }
  0x4d   :  { %529 = vmatpush3.bf16.msra.mxu0 %v528_v4  ;;  %532 = vmatpush3.bf16.msra.mxu1 %v531_v8  ;;  %v537_v14 = vpack.c.bf16 %v170_v13, %v169_v12  ;;  %v172_v16 = vld [vmem:[#allocation7 + $0x38] sm:$0xff]  ;;  %v173_v18 = vld [vmem:[#allocation7 + $0x40] sm:$0xff]  ;;  %v174_v19 = vld [vmem:[#allocation7 + $0x48] sm:$0xff] }
  0x4e   :  { %554 = vmatprep.subr.bf16.mxu0 %v712_v0  ;;  %533 = vmatprep.subr.bf16.mxu1 %v712_v0  ;;  %v540_v17 = vpack.c.bf16 %v172_v16, %v171_v15  ;;  %v543_v20 = vpack.c.bf16 %v174_v19, %v173_v18  ;;  %v175_v21 = vld [vmem:[#allocation7 + $0x50] sm:$0xff]  ;;  %v176_v22 = vld [vmem:[#allocation7 + $0x58] sm:$0xff]  ;;  %v177_v24 = vld [vmem:[#allocation7 + $0x60] sm:$0xff] }
  0x4f   :  { %v546_v23 = vpack.c.bf16 %v176_v22, %v175_v21  ;;  %v178_v25 = vld [vmem:[#allocation7 + $0x68] sm:$0xff]  ;;  %v179_v27 = vld [vmem:[#allocation7 + $0x70] sm:$0xff]  ;;  %v180_v28 = vld [vmem:[#allocation7 + $0x78] sm:$0xff] }
  0x50   :  { %455 = vmatmul.mubr.msk.f32.vlgmr.msra.gmra.mrb[0].mxu0 %vm90_vm1, %v80_v10  ;;  %v549_v26 = vpack.c.bf16 %v178_v25, %v177_v24  ;;  %v552_v29 = vpack.c.bf16 %v180_v28, %v179_v27  ;;  %v259_v30 = vld [vmem:[#allocation8] sm:$0xff]  ;;  %v260_v31 = vld [vmem:[#allocation8 + $0x8] sm:$0xff]  ;;  %v261_v32 = vld [vmem:[#allocation8 + $0x10] sm:$0xff] }
  0x51   :  { %524 = vmatprep.mubr.msk.f32.mxu0 %vm713_vm0, %v714_v1  ;;  %535 = vmatpush3.bf16.msra.mxu1 %v534_v11  ;;  %v555_v33 = vpack.c.bf16 %v260_v31, %v259_v30  ;;  %v262_v34 = vld [vmem:[#allocation8 + $0x18] sm:$0xff]  ;;  %v263_v36 = vld [vmem:[#allocation8 + $0x20] sm:$0xff]  ;;  %v264_v37 = vld [vmem:[#allocation8 + $0x28] sm:$0xff] }
  0x52   :  { %536 = vmatprep.subr.bf16.mxu1 %v712_v0  ;;  %v558_v35 = vpack.c.bf16 %v262_v34, %v261_v32  ;;  %v561_v38 = vpack.c.bf16 %v264_v37, %v263_v36  ;;  %v265_v39 = vld [vmem:[#allocation8 + $0x30] sm:$0xff]  ;;  %v266_v40 = vld [vmem:[#allocation8 + $0x38] sm:$0xff]  ;;  %v267_v42 = vld [vmem:[#allocation8 + $0x40] sm:$0xff] }
  0x53   :  { %556 = vmatpush3.bf16.msra.mxu0 %v555_v33  ;;  %v564_v41 = vpack.c.bf16 %v266_v40, %v265_v39  ;;  %v268_v43 = vld [vmem:[#allocation8 + $0x48] sm:$0xff]  ;;  %v269_v45 = vld [vmem:[#allocation8 + $0x50] sm:$0xff]  ;;  %v270_v46 = vld [vmem:[#allocation8 + $0x58] sm:$0xff] }
  0x54   :  { %557 = vmatprep.subr.bf16.mxu0 %v712_v0  ;;  %v567_v44 = vpack.c.bf16 %v268_v43, %v267_v42  ;;  %v570_v47 = vpack.c.bf16 %v270_v46, %v269_v45  ;;  %v271_v48 = vld [vmem:[#allocation8 + $0x60] sm:$0xff]  ;;  %v272_v49 = vld [vmem:[#allocation8 + $0x68] sm:$0xff]  ;;  %v273_v56 = vld [vmem:[#allocation8 + $0x70] sm:$0xff] }
  0x55   :  { %538 = vmatpush3.bf16.msra.mxu1 %v537_v14  ;;  %v573_v50 = vpack.c.bf16 %v272_v49, %v271_v48  ;;  %v409_v51 = vld [vmem:[%s856_s2] ss:$0 sm:$0xff]  ;;  %v274_v57 = vld [vmem:[#allocation8 + $0x78] sm:$0xff] }
  0x56   :  { %539 = vmatprep.subr.bf16.mxu1 %v712_v0  ;;  %v576_v58 = vpack.c.bf16 %v274_v57, %v273_v56  ;;  %v411_v59 = vld [vmem:[%s858_s4] ss:$0 sm:$0xff]  ;;  %s715_s4 = smov [#allocation10]  }
  0x57   :  { %559 = vmatpush3.bf16.msra.mxu0 %v558_v35  ;;  %v412_v1 = vld [vmem:[%s860_s6] ss:$0 sm:$0xff]  ;;  %s398_s28 = sshll.u32 %s715_s4, 4  ;;  %s399_s28 = int_to_ptr.vmem [resolvable:$true] %s398_s28 }
  0x58   :  { %560 = vmatprep.subr.bf16.mxu0 %v712_v0  ;;  %s676_s29 = scalar_lea.vmem %s399_s28, 128  ;;  %p681_p5 = scmp.lt.s32.totalorder %s399_s28, %s399_s28 }
  0x59   :  { %541 = vmatpush3.bf16.msra.mxu1 %v540_v17  ;;  %p677_p4 = scmp.ne.s32.totalorder %s399_s28, %s676_s29  ;;  %p682_p6 = scmp.lt.s32.totalorder %s676_s29, %s676_s29 }
  0x5a   :  { %542 = vmatprep.subr.bf16.mxu1 %v712_v0 }
  0x5b   :  { %562 = vmatpush3.bf16.msra.mxu0 %v561_v38  ;;  %p683_p7 = por %p682_p6, %p681_p5 }
  0x5c   :  { %563 = vmatprep.subr.bf16.mxu0 %v712_v0 }
  0x5d   :  { %544 = vmatpush3.bf16.msra.mxu1 %v543_v20  ;;  %p684_p8 = pnand %p683_p7, %p677_p4 }
  0x5e   :  { %545 = vmatprep.subr.bf16.mxu1 %v712_v0 }
  0x5f   :  { %565 = vmatpush3.bf16.msra.mxu0 %v564_v41 }
  0x60   :  { %566 = vmatprep.subr.bf16.mxu0 %v712_v0 }
  0x61   :  { %547 = vmatpush3.bf16.msra.mxu1 %v546_v23 }
  0x62   :  { %548 = vmatprep.subr.bf16.mxu1 %v712_v0 }
  0x63   :  { %568 = vmatpush3.bf16.msra.mxu0 %v567_v44 }
  0x64   :  { %569 = vmatprep.subr.bf16.mxu0 %v712_v0 }
  0x65   :  { %550 = vmatpush3.bf16.msra.mxu1 %v549_v26 }
  0x66   :  { %551 = vmatprep.subr.bf16.mxu1 %v712_v0 }
  0x67   :  { %571 = vmatpush3.bf16.msra.mxu0 %v570_v47 }
  0x68   :  { %572 = vmatprep.subr.bf16.mxu0 %v712_v0 }
  0x69   :  { %553 = vmatpush3.bf16.msra.mxu1 %v552_v29 }
  0x6b   :  { %574 = vmatpush3.bf16.msra.mxu0 %v573_v50 }
  0x6c   :  { %575 = vmatprep.subr.bf16.mxu0 %v712_v0  ;;  %v352_v0 = vlaneseq }
  0x6e   :  { %v353_v3 = vand.u32 127, %v352_v0 }
  0x6f   :  { %577 = vmatpush3.bf16.msra.mxu0 %v576_v58 }
  0x70   :  { %vm354_vm2 = vcmp.ge.s32.totalorder %v353_v3, 4 }
 0x123   :  { %v160_v52 = vpop.f32.mrb[0].mxu0 }
 0x124   :  { %v161_v53 = vadd.f32 %v409_v51, %v160_v52  ;;  %v456_v54 = vpop.f32.mrb[1].mxu0 }
 0x126   :  { %v164_v55 = vmax.f32 %v161_v53, 0.0 }
 0x128   :  { %490 = vmatmul.mubr.f32.vlgmr.msra.gmra.mrb[0].mxu1 %v164_v55 }
 0x1fb   :  { %v254_v60 = vpop.f32.mrb[0].mxu1 }
 0x1fc   :  { %v255_v61 = vadd.f32 %v411_v59, %v254_v60  ;;  %v491_v62 = vpop.f32.mrb[1].mxu1 }
 0x1fe   :  { %v258_v63 = vmax.f32 %v255_v61, 0.0 }
 0x200   :  { %525 = vmatmul.mubr.f32.vlgmr.msra.gmra.mrb[2].mxu0 %v258_v63 }
 0x2d3   :  { %v348_v2 = vpop.f32.mrb[2].mxu0 }
 0x2d4   :  { %v349_v4 = vadd.f32 %v412_v1, %v348_v2  ;;  %v526_v5 = vpop.f32.mrb[3].mxu0 }
 0x2d6   :  { %v355_v6 = vmax.f32 %v349_v4, -20.0 }
 0x2d8   :  { %v356_v7 = vmin.f32 %v355_v6, 2.0 }
 0x2da   :  { %v357_v8 = vsel %vm354_vm2, %v356_v7, %v349_v4 }
 0x2db   :  { %358 = vxpose.xlu0.b32.start.end [1/1] (short) (narrow) %v357_v8, 8 }
 0x35b   :  { %v374_v9 = vpop.trf.xlu0 }
 0x35c   :  { %391 = vst.msk [vmem:[#allocation10] sm:$0xff] %vm390_vm3, %v374_v9 }
 0x35d   :  { %687 = shalt.err (!%p684_p8)
}
 0x35e   :  { %s688_s8 = scalar_lea.hbm %s861_s7, 128 }
 0x35f   :  { %p689_p9 = scmp.ne.s32.totalorder %s861_s7, %s688_s8  ;;  %p692_p10 = scmp.lt.u32.totalorder %s688_s8, %s861_s7 }
 0x361   :  { %p694_p11 = pnand %p692_p10, %p689_p9 }
 0x363   :  { %697 = shalt.err (!%p694_p11)
}
 0x364   :  { %401 = dma.vmem_to_hbm [thread:$0]  %s399_s28, 128, %s861_s7, [#allocation4]  }
 0x365   :  { %704 = dma.done.wait [#allocation4], 128  }
 0x366   :  { %705 = vsyncadd [#allocation4], 4294967168 }
 0x367   :  { %405 = vsyncpa [#allocation3], 1 }
 0x368   :  { %406 = vsyncpa [#allocation6], 1 }
 0x369   :  { %407 = vsyncpa [#allocation9], 1 }
 0x36a   :  { %408 = vsyncpa [#allocation4], 1 }

</bundles_post_ra>
